<compile_context>
chip_gen: v7x
topology: tpu7x:2x2x1
jax: 0.10.0
libtpu: 0.0.40
codegen_flags: <defaults>
</compile_context>

<pallas_src>
import functools

import jax
import jax.numpy as jnp
from jax.experimental import pallas as pl
from jax.experimental.pallas import tpu as pltpu


def _round_up(x, m):
    return (x + m - 1) // m * m


@functools.partial(jax.jit, static_argnames=("tile_b",))
def regressor_classifier_forward(config, meta, params, tile_b=4096):
    """config: (B, config_dim) f32, meta: (B, meta_dim-1) f32 -> (reg (B,1), class (B,4))."""
    B, config_dim = config.shape
    meta_c = meta.shape[1]
    hidden = params["fc1_c"]["weight"].shape[0]
    h4 = params["fc2_c"]["weight"].shape[0]                # hidden // 4
    n_cls = params["fc1_classifier"]["weight"].shape[0]    # 4
    eps = 1e-5

    # ---- fold eval-mode BatchNorm1d into the first Linear of each branch ----
    def fold_bn(p):
        scale = p["gamma"] / jnp.sqrt(p["running_var"] + eps)
        shift = p["beta"] - p["running_mean"] * scale
        return scale, shift

    s_cfg, t_cfg = fold_bn(params["bn_config"])
    s_meta, t_meta = fold_bn(params["bn_meta"])

    # PyTorch Linear stores (out, in); transpose to (in, out).
    w1 = params["fc1_c"]["weight"].T                       # (config_dim, hidden)
    wc = params["fc1_classifier"]["weight"].T              # (meta_c, 4)
    # y = (x*s + t) @ W + b  ==  x @ (s[:,None]*W) + (t @ W + b)
    w1f = s_cfg[:, None] * w1
    b1f = t_cfg @ w1 + params["fc1_c"]["bias"]
    wcf = s_meta[:, None] * wc
    bcf = t_meta @ wc + params["fc1_classifier"]["bias"]

    w2 = params["fc2_c"]["weight"].T                       # (hidden, h4)
    b2 = params["fc2_c"]["bias"]
    w6 = params["fc6"]["weight"].T                         # (h4, 4)
    b6 = params["fc6"]["bias"]
    w7 = params["fc7"]["weight"][0]                        # (4,)  row of fc7
    b7 = params["fc7"]["bias"]                             # (1,)

    # ---- consolidate all weights into one bf16 pack (8-row-aligned segments) --
    o_w1 = 0
    o_wc = o_w1 + _round_up(config_dim, 8)
    o_w2 = o_wc + _round_up(meta_c, 8)
    o_w6 = o_w2 + _round_up(hidden, 8)
    w_rows = o_w6 + _round_up(h4, 8)
    w_cols = max(hidden, h4, n_cls)
    wpack = jnp.zeros((w_rows, w_cols), jnp.float32)
    wpack = wpack.at[o_w1:o_w1 + config_dim, :hidden].set(w1f)
    wpack = wpack.at[o_wc:o_wc + meta_c, :n_cls].set(wcf)
    wpack = wpack.at[o_w2:o_w2 + hidden, :h4].set(w2)
    wpack = wpack.at[o_w6:o_w6 + h4, :n_cls].set(w6)
    wpack = wpack.astype(jnp.bfloat16)

    # ---- all biases / small f32 vectors packed into one (8, cols) array -------
    b_cols = max(hidden, h4, n_cls, 8)
    bpack = jnp.zeros((8, b_cols), jnp.float32)
    bpack = bpack.at[0, :hidden].set(b1f)
    bpack = bpack.at[1, :n_cls].set(bcf)
    bpack = bpack.at[2, :h4].set(b2)
    bpack = bpack.at[3, :n_cls].set(b6)
    bpack = bpack.at[4, :n_cls].set(w7)
    bpack = bpack.at[5, 0].set(b7[0])

    # ---- batch tiling: 1-D parallel grid, ragged last block, no full-array pad --
    tile_b = int(min(max(tile_b, 8), _round_up(B, 8)))
    tile_b = _round_up(tile_b, 8)
    grid = (pl.cdiv(B, tile_b),)

    # VMEM budget from the actual lane-padded block sizes (double-buffered I/O
    # plus a conservative allowance for in-body f32/bf16 intermediates).
    def _lane_bytes(n, itemsize=4):
        return _round_up(max(n, 1), 128) * itemsize

    io_row = 2 * (_lane_bytes(config_dim) + _lane_bytes(meta_c)
                  + _lane_bytes(n_cls) + _lane_bytes(1))
    tmp_row = 3 * _lane_bytes(hidden) + 3 * _lane_bytes(n_cls) + 2 * _lane_bytes(h4)
    vmem_bytes = int(min(max((io_row + tmp_row) * tile_b + (4 << 20), 32 << 20),
                         64 << 20))

    def kernel(cfg_ref, meta_ref, wpack_ref, bpack_ref, class_ref, reg_ref):
        # bf16 cast happens here, in VMEM — inputs arrive straight from HBM.
        xc = cfg_ref[...].astype(jnp.bfloat16)
        xm = meta_ref[...].astype(jnp.bfloat16)

        # ---- classifier branch: softmax(fc1_classifier(bn_meta(meta))) -------
        wc_w = wpack_ref[o_wc:o_wc + meta_c, :n_cls]
        logits = (jnp.dot(xm, wc_w, preferred_element_type=jnp.float32)
                  + bpack_ref[1:2, :n_cls])
        logits = logits - jnp.max(logits, axis=1, keepdims=True)
        e = jnp.exp(logits)
        out_class = e / jnp.sum(e, axis=1, keepdims=True)   # exact divide

        # ---- regressor branch: relu(fc1_c) -> relu(fc2_c) -> fc6 (all MXU) ---
        w1_w = wpack_ref[o_w1:o_w1 + config_dim, :hidden]
        h = (jnp.dot(xc, w1_w, preferred_element_type=jnp.float32)
             + bpack_ref[0:1, :hidden])
        h = jnp.maximum(h, 0.0)                              # dropout = identity (eval)

        w2_w = wpack_ref[o_w2:o_w2 + hidden, :h4]
        h2 = (jnp.dot(h.astype(jnp.bfloat16), w2_w,
                      preferred_element_type=jnp.float32)
              + bpack_ref[2:3, :h4])
        h2 = jnp.maximum(h2, 0.0)                            # dropout = identity (eval)

        w6_w = wpack_ref[o_w6:o_w6 + h4, :n_cls]
        multireg = (jnp.dot(h2.astype(jnp.bfloat16), w6_w,
                            preferred_element_type=jnp.float32)
                    + bpack_ref[3:4, :n_cls])

        # ---- fc7(class * multireg): K=4 -> VPU mul + lane reduce --------------
        prod = out_class * multireg
        reg = (jnp.sum(prod * bpack_ref[4:5, :n_cls], axis=1, keepdims=True)
               + bpack_ref[5:6, 0:1])

        # write each output ref directly — no concatenated temporary
        class_ref[...] = out_class.astype(class_ref.dtype)
        reg_ref[...] = reg.astype(reg_ref.dtype)

    out_class, out_reg = pl.pallas_call(
        kernel,
        out_shape=(jax.ShapeDtypeStruct((B, n_cls), jnp.float32),
                   jax.ShapeDtypeStruct((B, 1), jnp.float32)),
        grid=grid,
        in_specs=[
            pl.BlockSpec((tile_b, config_dim), lambda i: (i, 0)),
            pl.BlockSpec((tile_b, meta_c), lambda i: (i, 0)),
            pl.BlockSpec(wpack.shape, lambda i: (0, 0)),   # resident packed weights
            pl.BlockSpec(bpack.shape, lambda i: (0, 0)),   # resident packed biases
        ],
        out_specs=[
            pl.BlockSpec((tile_b, n_cls), lambda i: (i, 0)),
            pl.BlockSpec((tile_b, 1), lambda i: (i, 0)),
        ],
        compiler_params=pltpu.CompilerParams(
            dimension_semantics=("parallel",),
            vmem_limit_bytes=vmem_bytes,
        ),
    )(config, meta, wpack, bpack)

    return out_reg, out_class


def _reference_forward(config, meta, params):
    """Pure-JAX eval-mode reference matching the PyTorch forward()."""
    eps = 1e-5

    def bn(x, p):
        return ((x - p["running_mean"]) / jnp.sqrt(p["running_var"] + eps)
                * p["gamma"] + p["beta"])

    def lin(x, p):
        return x @ p["weight"].T + p["bias"]

    m = bn(meta, params["bn_meta"])
    out_class = jax.nn.softmax(lin(m, params["fc1_classifier"]), axis=1)
    c = bn(config, params["bn_config"])
    c = jax.nn.relu(lin(c, params["fc1_c"]))
    c = jax.nn.relu(lin(c, params["fc2_c"]))
    multireg = lin(c, params["fc6"])
    reg = lin(out_class * multireg, params["fc7"])
    return reg, out_class


def init_params(key, config_dim, meta_dim, hidden_dim=32):
    """Deterministic synthetic parameter init matching the nn.Module shapes."""
    keys = jax.random.split(key, 16)
    ki = iter(keys)

    def linear(in_f, out_f):
        k_w, k_b = jax.random.split(next(ki))
        bound = 1.0 / jnp.sqrt(in_f)
        return {
            "weight": jax.random.uniform(k_w, (out_f, in_f), jnp.float32, -bound, bound),
            "bias": jax.random.uniform(k_b, (out_f,), jnp.float32, -bound, bound),
        }

    def bn(n):
        k1, k2 = jax.random.split(next(ki))
        return {
            "gamma": 1.0 + 0.1 * jax.random.normal(k1, (n,), jnp.float32),
            "beta": 0.1 * jax.random.normal(k2, (n,), jnp.float32),
            "running_mean": 0.05 * jax.random.normal(next(ki), (n,), jnp.float32),
            "running_var": jnp.abs(1.0 + 0.1 * jax.random.normal(next(ki), (n,), jnp.float32)),
        }

    return {
        "fc1_classifier": linear(meta_dim - 1, 4),
        "fc1_c": linear(config_dim, hidden_dim),
        "fc2_c": linear(hidden_dim, hidden_dim // 4),
        "fc6": linear(hidden_dim // 4, 4),
        "fc7": linear(4, 1),
        "bn_meta": bn(meta_dim - 1),
        "bn_config": bn(config_dim),
    }
    # note: fc2_classifier, fc3_c, fc4, fc5, bn_cat, sig are unused in forward()


if __name__ == "__main__":
    B, config_dim, meta_dim, hidden_dim = 8, 16, 5, 32

    root = jax.random.PRNGKey(0)
    k_p, k_c, k_m = jax.random.split(root, 3)
    params = init_params(k_p, config_dim, meta_dim, hidden_dim)

    config = jax.random.normal(k_c, (B, config_dim), jnp.float32)
    meta = jax.random.normal(k_m, (B, meta_dim - 1), jnp.float32)

    out_reg, out_class = regressor_classifier_forward(config, meta, params)
    jax.block_until_ready((out_reg, out_class))

    assert out_reg.shape == (B, 1) and out_class.shape == (B, 4)

    ref_reg, ref_class = _reference_forward(config, meta, params)
    assert jnp.allclose(out_class, ref_class, atol=5e-2, rtol=5e-2), "class mismatch"
    assert jnp.allclose(out_reg, ref_reg, atol=5e-2, rtol=5e-2), "reg mismatch"

    print("KERNEL_OK")
</pallas_src>

<mosaic_0001>
module attributes {stable_mosaic.version = 11 : i64} {
  func.func @kernel(%arg0: i32, %arg1: memref<8x16xf32, #tpu.memory_space<vmem>>, %arg2: memref<8x4xf32, #tpu.memory_space<vmem>>, %arg3: memref<64x32xbf16, #tpu.memory_space<vmem>>, %arg4: memref<8x32xf32, #tpu.memory_space<vmem>>, %arg5: memref<8x4xf32, #tpu.memory_space<vmem>>, %arg6: memref<8x1xf32, #tpu.memory_space<vmem>>) attributes {dimension_semantics = [#tpu.dimension_semantics<parallel>], iteration_bounds = array<i64: 1>, scalar_prefetch = 0 : i64, scratch_operands = 0 : i64, tpu.core_type = #tpu.core_type<tc>, window_params = [{transform_indices = @transform_0, window_bounds = array<i64: 8, 16>}, {transform_indices = @transform_1, window_bounds = array<i64: 8, 4>}, {pipeline_mode = #tpu.pipeline_mode<synchronous>, transform_indices = @transform_2, window_bounds = array<i64: 64, 32>}, {pipeline_mode = #tpu.pipeline_mode<synchronous>, transform_indices = @transform_3, window_bounds = array<i64: 8, 32>}, {transform_indices = @transform_4, window_bounds = array<i64: 8, 4>}, {transform_indices = @transform_5, window_bounds = array<i64: 8, 1>}]} {
    %c0 = arith.constant 0 : index
    %c0_0 = arith.constant 0 : index
    %0 = vector.load %arg1[%c0, %c0_0] : memref<8x16xf32, #tpu.memory_space<vmem>>, vector<8x16xf32>
    %1 = arith.truncf %0 : vector<8x16xf32> to vector<8x16xbf16>
    %c0_1 = arith.constant 0 : index
    %c0_2 = arith.constant 0 : index
    %2 = vector.load %arg2[%c0_1, %c0_2] : memref<8x4xf32, #tpu.memory_space<vmem>>, vector<8x4xf32>
    %3 = arith.truncf %2 : vector<8x4xf32> to vector<8x4xbf16>
    %c16 = arith.constant 16 : index
    %c0_3 = arith.constant 0 : index
    %4 = vector.load %arg3[%c16, %c0_3] : memref<64x32xbf16, #tpu.memory_space<vmem>>, vector<4x4xbf16>
    %cst = arith.constant dense<0.000000e+00> : vector<8x4xf32>
    %5 = tpu.matmul %3, %4, %cst {dimension_numbers = #tpu.dot_dimension_numbers<[1], [0], [0], [1], [0, 0, 1, 1], [], []>} : vector<8x4xbf16>, vector<4x4xbf16>, vector<8x4xf32> -> vector<8x4xf32>
    %c1 = arith.constant 1 : index
    %c0_4 = arith.constant 0 : index
    %6 = vector.load %arg4[%c1, %c0_4] : memref<8x32xf32, #tpu.memory_space<vmem>>, vector<1x4xf32>
    %7 = vector.broadcast %6 : vector<1x4xf32> to vector<8x4xf32>
    %8 = arith.addf %5, %7 : vector<8x4xf32>
    %cst_5 = arith.constant dense<0xFF800000> : vector<8xf32>
    %9 = vector.multi_reduction <maximumf>, %8, %cst_5 [1] : vector<8x4xf32> to vector<8xf32>
    %10 = vector.shape_cast %9 : vector<8xf32> to vector<8x1xf32>
    %11 = vector.broadcast %10 : vector<8x1xf32> to vector<8x4xf32>
    %12 = arith.subf %8, %11 : vector<8x4xf32>
    %13 = math.exp %12 : vector<8x4xf32>
    %cst_6 = arith.constant dense<0.000000e+00> : vector<8xf32>
    %14 = vector.multi_reduction <add>, %13, %cst_6 [1] : vector<8x4xf32> to vector<8xf32>
    %15 = vector.shape_cast %14 : vector<8xf32> to vector<8x1xf32>
    %16 = vector.broadcast %15 : vector<8x1xf32> to vector<8x4xf32>
    %17 = arith.divf %13, %16 : vector<8x4xf32>
    %c0_7 = arith.constant 0 : index
    %c0_8 = arith.constant 0 : index
    %18 = vector.load %arg3[%c0_7, %c0_8] : memref<64x32xbf16, #tpu.memory_space<vmem>>, vector<16x32xbf16>
    %cst_9 = arith.constant dense<0.000000e+00> : vector<8x32xf32>
    %19 = tpu.matmul %1, %18, %cst_9 {dimension_numbers = #tpu.dot_dimension_numbers<[1], [0], [0], [1], [0, 0, 1, 1], [], []>} : vector<8x16xbf16>, vector<16x32xbf16>, vector<8x32xf32> -> vector<8x32xf32>
    %c0_10 = arith.constant 0 : index
    %c0_11 = arith.constant 0 : index
    %20 = vector.load %arg4[%c0_10, %c0_11] : memref<8x32xf32, #tpu.memory_space<vmem>>, vector<1x32xf32>
    %21 = vector.broadcast %20 : vector<1x32xf32> to vector<8x32xf32>
    %22 = arith.addf %19, %21 : vector<8x32xf32>
    %cst_12 = arith.constant 0.000000e+00 : f32
    %23 = vector.broadcast %cst_12 : f32 to vector<8x32xf32>
    %24 = arith.maximumf %22, %23 : vector<8x32xf32>
    %c24 = arith.constant 24 : index
    %c0_13 = arith.constant 0 : index
    %25 = vector.load %arg3[%c24, %c0_13] : memref<64x32xbf16, #tpu.memory_space<vmem>>, vector<32x8xbf16>
    %26 = arith.truncf %24 : vector<8x32xf32> to vector<8x32xbf16>
    %cst_14 = arith.constant dense<0.000000e+00> : vector<8x8xf32>
    %27 = tpu.matmul %26, %25, %cst_14 {dimension_numbers = #tpu.dot_dimension_numbers<[1], [0], [0], [1], [0, 0, 1, 1], [], []>} : vector<8x32xbf16>, vector<32x8xbf16>, vector<8x8xf32> -> vector<8x8xf32>
    %c2 = arith.constant 2 : index
    %c0_15 = arith.constant 0 : index
    %28 = vector.load %arg4[%c2, %c0_15] : memref<8x32xf32, #tpu.memory_space<vmem>>, vector<1x8xf32>
    %29 = vector.broadcast %28 : vector<1x8xf32> to vector<8x8xf32>
    %30 = arith.addf %27, %29 : vector<8x8xf32>
    %cst_16 = arith.constant 0.000000e+00 : f32
    %31 = vector.broadcast %cst_16 : f32 to vector<8x8xf32>
    %32 = arith.maximumf %30, %31 : vector<8x8xf32>
    %c56 = arith.constant 56 : index
    %c0_17 = arith.constant 0 : index
    %33 = vector.load %arg3[%c56, %c0_17] : memref<64x32xbf16, #tpu.memory_space<vmem>>, vector<8x4xbf16>
    %34 = arith.truncf %32 : vector<8x8xf32> to vector<8x8xbf16>
    %cst_18 = arith.constant dense<0.000000e+00> : vector<8x4xf32>
    %35 = tpu.matmul %34, %33, %cst_18 {dimension_numbers = #tpu.dot_dimension_numbers<[1], [0], [0], [1], [0, 0, 1, 1], [], []>} : vector<8x8xbf16>, vector<8x4xbf16>, vector<8x4xf32> -> vector<8x4xf32>
    %c3 = arith.constant 3 : index
    %c0_19 = arith.constant 0 : index
    %36 = vector.load %arg4[%c3, %c0_19] : memref<8x32xf32, #tpu.memory_space<vmem>>, vector<1x4xf32>
    %37 = vector.broadcast %36 : vector<1x4xf32> to vector<8x4xf32>
    %38 = arith.addf %35, %37 : vector<8x4xf32>
    %39 = arith.mulf %17, %38 : vector<8x4xf32>
    %c4 = arith.constant 4 : index
    %c0_20 = arith.constant 0 : index
    %40 = vector.load %arg4[%c4, %c0_20] : memref<8x32xf32, #tpu.memory_space<vmem>>, vector<1x4xf32>
    %41 = vector.broadcast %40 : vector<1x4xf32> to vector<8x4xf32>
    %42 = arith.mulf %39, %41 : vector<8x4xf32>
    %cst_21 = arith.constant dense<0.000000e+00> : vector<8xf32>
    %43 = vector.multi_reduction <add>, %42, %cst_21 [1] : vector<8x4xf32> to vector<8xf32>
    %44 = vector.shape_cast %43 : vector<8xf32> to vector<8x1xf32>
    %c5 = arith.constant 5 : index
    %c0_22 = arith.constant 0 : index
    %45 = vector.load %arg4[%c5, %c0_22] : memref<8x32xf32, #tpu.memory_space<vmem>>, vector<1x1xf32>
    %46 = vector.broadcast %45 : vector<1x1xf32> to vector<8x1xf32>
    %47 = arith.addf %44, %46 : vector<8x1xf32>
    %c0_23 = arith.constant 0 : index
    %c0_24 = arith.constant 0 : index
    %48 = vector.load %arg5[%c0_23, %c0_24] : memref<8x4xf32, #tpu.memory_space<vmem>>, vector<8x4xf32>
    tpu.vector_store %arg5[%c0_23, %c0_24], %17 {strides = array<i32>} : memref<8x4xf32, #tpu.memory_space<vmem>>, vector<8x4xf32>,
    %c0_25 = arith.constant 0 : index
    %c0_26 = arith.constant 0 : index
    %49 = vector.load %arg6[%c0_25, %c0_26] : memref<8x1xf32, #tpu.memory_space<vmem>>, vector<8x1xf32>
    tpu.vector_store %arg6[%c0_25, %c0_26], %47 {strides = array<i32>} : memref<8x1xf32, #tpu.memory_space<vmem>>, vector<8x1xf32>,
    return
  }
  func.func @transform_0(%arg0: i32) -> (i32, i32) {
    %c0_i32 = arith.constant 0 : i32
    %c0_i32_0 = arith.constant 0 : i32
    return %arg0, %c0_i32 : i32, i32
  }
  func.func @transform_1(%arg0: i32) -> (i32, i32) {
    %c0_i32 = arith.constant 0 : i32
    %c0_i32_0 = arith.constant 0 : i32
    return %arg0, %c0_i32 : i32, i32
  }
  func.func @transform_2(%arg0: i32) -> (i32, i32) {
    %c0_i32 = arith.constant 0 : i32
    %c0_i32_0 = arith.constant 0 : i32
    %c0_i32_1 = arith.constant 0 : i32
    return %c0_i32, %c0_i32_0 : i32, i32
  }
  func.func @transform_3(%arg0: i32) -> (i32, i32) {
    %c0_i32 = arith.constant 0 : i32
    %c0_i32_0 = arith.constant 0 : i32
    %c0_i32_1 = arith.constant 0 : i32
    return %c0_i32, %c0_i32_0 : i32, i32
  }
  func.func @transform_4(%arg0: i32) -> (i32, i32) {
    %c0_i32 = arith.constant 0 : i32
    %c0_i32_0 = arith.constant 0 : i32
    return %arg0, %c0_i32 : i32, i32
  }
  func.func @transform_5(%arg0: i32) -> (i32, i32) {
    %c0_i32 = arith.constant 0 : i32
    %c0_i32_0 = arith.constant 0 : i32
    return %arg0, %c0_i32 : i32, i32
  }
}

</mosaic_0001>

<bundles_post_ra>
// kernel: regressor_classifier_forward.1
= control target key start
LH: loop header
LB: loop body
LE: loop exit
PB: predicated region body
PF: predicated region fallthrough
CT: control target
= control target key end

     0   :  { %vm34_vm0 = vcmask 1041408   ;;  %v353_v0 = vmov 0.0   ;;  %vm354_vm1 = vmmov 0   ;;  %vm30_vm2 = vcmask 31744   ;;  %s439_s2 = inlined_call_operand.vmem [shape: bf16[64,32], index: 2, kind: input, shape index: {}]   ;;  %s440_s1 = inlined_call_operand.vmem [shape: f32[8,4], index: 1, kind: input, shape index: {}]   ;;  %s441_s0 = inlined_call_operand.vmem [shape: f32[8,16], index: 0, kind: input, shape index: {}]   ;;  %s442_s3 = inlined_call_operand.vmem [shape: f32[8,32], index: 3, kind: input, shape index: {}]   ;;  %s443_s4 = inlined_call_operand.vmem [shape: f32[8,4], index: 4, kind: output, shape index: {0}]   ;;  %s444_s5 = inlined_call_operand.vmem [shape: f32[8,1], index: 5, kind: output, shape index: {1}]  }
   0x1   :  { %318 = vmatprep.subr.bf16.mxu0 %v353_v0  ;;  %v24_v1 = vld [vmem:[%s439_s2 + $0x8] sm:$0x3]  ;;  %324 = vmatprep.subr.bf16.mxu1 %v353_v0  ;;  %v346_v3 = vld [vmem:[%s439_s2] sm:$0xff]   ;;  %vm102_vm3 = vcmask 130048   ;;  %v347_v8 = vld [vmem:[%s439_s2 + $0xc] sm:$0xff]   ;;  %vm169_vm4 = vcmask 261120  }
   0x2   :  { %v36_v2 = vsel %vm34_vm0, %v24_v1, 0  ;;  %320 = vmatprep.mubr.msk.bf16.mxu0 %vm354_vm1, %v353_v0  ;;  %v22_v4 = vld [vmem:[%s440_s1] sm:$0xff]  ;;  %326 = vmatprep.mubr.msk.bf16.mxu1 %vm354_vm1, %v353_v0  ;;  %v348_v9 = vld [vmem:[%s439_s2 + $0x14] sm:$0xff]   ;;  %v214_v25 = vld [vmem:[%s439_s2 + $0x1c] sm:$0xf]  ;;  %vm225_vm5 = vcmask 1043456  }
   0x3   :  { %v20_v5 = vld [vmem:[%s441_s0] sm:$0xff]  ;;  %319 = vmatpush3.bf16.msra.mxu0 %v36_v2  ;;  %v23_v6 = vpack.c.bf16 %v22_v4, %v22_v4  ;;  %325 = vmatpush3.bf16.msra.mxu1 %v346_v3  ;;  %v227_v26 = vsel %vm225_vm5, %v214_v25, 0  ;;  %vm221_vm6 = vcmask 64512   ;;  %vm286_vm7 = vcmask 7168  }
   0x4   :  { %v21_v7 = vpack.c.bf16 %v20_v5, %v20_v5  ;;  %330 = vmatprep.subr.bf16.mxu0 %v353_v0  ;;  %338 = vmatprep.subr.bf16.mxu1 %v353_v0  ;;  %v296_v10 = vld [vmem:[%s442_s3 + $0x1] ss:$0 sm:$0xff]  ;;  %v298_v11 = vld [vmem:[%s442_s3] ss:$0 sm:$0xff]  ;;  %v301_v32 = vld [vmem:[%s442_s3 + $0x2] ss:$0 sm:$0xff] }
   0x5   :  { %v305_v43 = vld [vmem:[%s442_s3 + $0x3] ss:$0 sm:$0xff]  ;;  %v307_v48 = vld [vmem:[%s442_s3 + $0x4] ss:$0 sm:$0xff]  ;;  %v308_v53 = vld [vmem:[%s442_s3 + $0x5] ss:$0 sm:$0xff] }
   0x6   :  { %321 = vmatmul.mubr.msk.bf16.vlgmr.msra.gmra.mrb[0].mxu0 %vm30_vm2, %v23_v6  ;;  %327 = vmatmul.mubr.msk.bf16.vlgmr.msra.gmra.mrb[0].mxu1 %vm102_vm3, %v21_v7 }
   0x7   :  { %334 = vmatprep.mubr.msk.bf16.mxu0 %vm354_vm1, %v353_v0  ;;  %340 = vmatprep.mubr.msk.bf16.mxu1 %vm354_vm1, %v353_v0 }
   0x8   :  { %331 = vmatpush3.bf16.msra.mxu0 %v347_v8  ;;  %339 = vmatpush3.bf16.msra.mxu1 %v227_v26 }
   0x9   :  { %332 = vmatprep.subr.bf16.mxu0 %v353_v0 }
   0xc   :  { %333 = vmatpush3.bf16.msra.mxu0 %v348_v9 }
  0xd9   :  { %v72_v12 = vpop.f32.mrb[0].mxu0  ;;  %v140_v14 = vpop.f32.mrb[0].mxu1 }
  0xda   :  { %v73_v13 = vadd.f32 %v296_v10, %v72_v12  ;;  %v322_v15 = vpop.f32.mrb[1].mxu0  ;;  %v141_v16 = vadd.f32 %v298_v11, %v140_v14  ;;  %v328_v17 = vpop.f32.mrb[1].mxu1 }
  0xdb   :  { %v75_v18 = vpop.f32.mrb[2].mxu0  ;;  %v143_v19 = vpop.f32.mrb[2].mxu1 }
  0xdc   :  { %v78_v20 = vsel %vm30_vm2, %v73_v13, -inf  ;;  %v323_v21 = vpop.f32.mrb[3].mxu0  ;;  %v146_v22 = vmax.f32 %v141_v16, 0.0  ;;  %v329_v23 = vpop.f32.mrb[3].mxu1 }
  0xdd   :  { %79 = vmax.xlane.f32.xlu0 %v78_v20 }
  0xde   :  { %v151_v24 = vpack.c.bf16 %v146_v22, %v146_v22 }
  0xe0   :  { %335 = vmatmul.mubr.msk.bf16.vlgmr.msra.gmra.mrb[4].mxu0 %vm169_vm4, %v151_v24 }
 0x16a   :  { %v80_v27 = vpop.xlane.xlu0 %79 }
 0x16b   :  { %v81_v28 = vsub.f32 %v73_v13, %v80_v27 }
 0x16d   :  { %v82_v29 = vmul.f32 1.442695, %v81_v28 }
 0x16f   :  { %349 = vpow2.f32 %v82_v29 }
 0x179   :  { %v350_v30 = vpop.eup %349 }
 0x17a   :  { %v84_v31 = vsel %vm30_vm2, %v350_v30, 0.0 }
 0x17b   :  { %85 = vadd.xlane.f32.xlu0 %v84_v31 }
 0x1b3   :  { %v207_v33 = vpop.f32.mrb[4].mxu0 }
 0x1b4   :  { %v208_v34 = vadd.f32 %v301_v32, %v207_v33  ;;  %v336_v35 = vpop.f32.mrb[5].mxu0 }
 0x1b5   :  { %v210_v36 = vpop.f32.mrb[6].mxu0 }
 0x1b6   :  { %v213_v37 = vmax.f32 %v208_v34, 0.0  ;;  %v337_v38 = vpop.f32.mrb[7].mxu0 }
 0x1b8   :  { %v215_v39 = vpack.c.bf16 %v213_v37, %v213_v37 }
 0x1ba   :  { %341 = vmatmul.mubr.msk.bf16.vlgmr.msra.gmra.mrb[4].mxu1 %vm221_vm6, %v215_v39 }
 0x208   :  { %v86_v40 = vpop.xlane.xlu0 %85 }
 0x209   :  { %351 = vrcp.f32 %v86_v40 }
 0x213   :  { %v352_v41 = vpop.eup %351 }
 0x214   :  { %v88_v42 = vmul.f32 %v352_v41, %v350_v30 }
 0x216   :  { %285 = vst.msk [vmem:[%s443_s4] sm:$0xff] %vm30_vm2, %v88_v42 }
 0x28d   :  { %v263_v44 = vpop.f32.mrb[4].mxu1 }
 0x28e   :  { %v264_v45 = vadd.f32 %v305_v43, %v263_v44  ;;  %v342_v46 = vpop.f32.mrb[5].mxu1 }
 0x28f   :  { %v266_v47 = vpop.f32.mrb[6].mxu1 }
 0x290   :  { %v269_v49 = vmul.f32 %v264_v45, %v88_v42  ;;  %v343_v50 = vpop.f32.mrb[7].mxu1 }
 0x292   :  { %v275_v51 = vmul.f32 %v307_v48, %v269_v49 }
 0x294   :  { %v276_v52 = vsel %vm30_vm2, %v275_v51, 0.0 }
 0x295   :  { %277 = vadd.xlane.f32.xlu1 %v276_v52 }
 0x322   :  { %v278_v54 = vpop.xlane.xlu1 %277 }
 0x323   :  { %v284_v55 = vadd.f32 %v308_v53, %v278_v54 }
 0x325   :  { %287 = vst.msk [vmem:[%s444_s5] sm:$0xff] %vm286_vm7, %v284_v55 }

</bundles_post_ra>
